<compile_context>
chip_gen: v6e
topology: v6e:2x2x1
jax: 0.10.0
libtpu: 0.0.40
codegen_flags: <defaults>
</compile_context>

<pallas_src>
import functools

import jax
import jax.numpy as jnp
from jax.experimental import pallas as pl
from jax.experimental.pallas import tpu as pltpu

LANE = 128


def _round_up(x, m):
    return ((x + m - 1) // m) * m


def _pad2d(x, rows, cols):
    r, c = x.shape
    return jnp.pad(x, ((0, rows - r), (0, cols - c)))


def _choose_tiles(n):
    """Pick row tile tm, reduction tile tk, and padded node count n_pad."""
    n128 = _round_up(n, LANE)
    tm = LANE
    for cand in (512, 256):
        # Keep >= 2 row tiles (v7x megacore sharding) and <= ~12.5% row padding.
        if n128 >= 2 * cand and _round_up(n128, cand) - n128 <= n128 // 8:
            tm = cand
            break
    tk = tm
    for cand in (2048, 1024, 512, 256, 128):
        if cand < tm or cand % tm != 0:
            continue
        if _round_up(n128, cand) - n128 <= n128 // 8:
            tk = cand
            break
    n_pad = _round_up(n128, max(tm, tk))
    return n_pad, tm, tk


# ---------------------------------------------------------------------------
# Kernel: one SAGEConv layer. grid = (row tiles of A, reduction over A columns).
# ---------------------------------------------------------------------------
def sage_layer_kernel(a_ref, x_ref, rdeg_ref, wl_ref, wr_ref, b_ref, o_ref,
                      acc_ref, root_ref, *, apply_relu, tm, tk):
    i = pl.program_id(0)
    k = pl.program_id(1)

    @pl.when(k == 0)
    def _():
        acc_ref[...] = jnp.zeros_like(acc_ref)
        # Root term (x_i @ W_r + b): once per row tile, off the per-k critical path.
        row0 = pl.multiple_of(i * tm, tm)
        xi = x_ref[pl.ds(row0, tm), :]
        root_ref[...] = (jnp.dot(xi, wr_ref[...],
                                 preferred_element_type=jnp.float32) + b_ref[...])

    # Neighbor-sum accumulation: (int8 count tile -> bf16) @ (tk rows of resident X).
    col0 = pl.multiple_of(k * tk, tk)
    xk = x_ref[pl.ds(col0, tk), :]
    acc_ref[...] += jnp.dot(a_ref[...].astype(jnp.bfloat16), xk,
                            preferred_element_type=jnp.float32)

    @pl.when(k == pl.num_programs(1) - 1)
    def _():
        # Exact f32 mean scaling, then the W_l contraction on the MXU.
        # (bf16 MXU inputs with f32 accumulation = intended inference precision.)
        agg = (acc_ref[...] * rdeg_ref[...]).astype(wl_ref.dtype)
        h = jnp.dot(agg, wl_ref[...],
                    preferred_element_type=jnp.float32) + root_ref[...]
        if apply_relu:
            h = jnp.maximum(h, 0.0)
        o_ref[...] = h.astype(o_ref.dtype)


def sage_layer(a_p, x_p, rdeg_p, w_l, w_r, bias, *, apply_relu, out_dtype, tm, tk):
    """One SAGEConv layer on padded operands.

    a_p: (Np, Np) int8 edge counts, x_p: (Np, Fp) bf16, rdeg_p: (Np, 1) f32,
    w_l / w_r: (Fp, Hp) bf16, bias: (1, Hp) f32. Returns (Np, Hp) in out_dtype.
    """
    n_pad = a_p.shape[0]
    fp = x_p.shape[1]
    hp = w_l.shape[1]
    n_rows = n_pad // tm
    n_k = n_pad // tk

    # A-tile multi-buffering: per-step MXU work is tiny vs the A DMA, so request a
    # third buffer when the reduction loop is long enough to use it.
    if n_k >= 3 and hasattr(pl, "Buffered"):
        a_spec = pl.BlockSpec((tm, tk), lambda i, k: (i, k),
                              pipeline_mode=pl.Buffered(3))
        a_buffers = 3
    else:
        a_spec = pl.BlockSpec((tm, tk), lambda i, k: (i, k))
        a_buffers = 2

    # VMEM budget: actual buffer bytes + headroom, capped well under v7x's 64 MiB/TC.
    need = (tm * tk * a_buffers                       # A tiles (int8)
            + 2 * n_pad * fp * 2                      # resident X (bf16), x2 safety
            + 2 * tm * LANE * 4                       # 1/deg tiles (lane-padded)
            + 2 * 2 * fp * hp * 2                     # W_l, W_r (bf16)
            + 2 * hp * 4                              # bias
            + 2 * tm * hp * 4                         # output tiles
            + tm * fp * 4 + tm * hp * 4)              # f32 scratch
    vmem_limit = int(min(max(2 * need, 24 * 1024 * 1024), 48 * 1024 * 1024))

    flops = 2 * n_pad * n_pad * fp + 2 * 2 * n_pad * fp * hp
    bytes_accessed = (a_p.size * a_p.dtype.itemsize
                      + x_p.size * x_p.dtype.itemsize
                      + rdeg_p.size * rdeg_p.dtype.itemsize
                      + (w_l.size + w_r.size) * w_l.dtype.itemsize
                      + bias.size * bias.dtype.itemsize
                      + n_pad * hp * jnp.dtype(out_dtype).itemsize)

    kernel = functools.partial(sage_layer_kernel, apply_relu=apply_relu, tm=tm, tk=tk)

    return pl.pallas_call(
        kernel,
        out_shape=jax.ShapeDtypeStruct((n_pad, hp), out_dtype),
        grid_spec=pltpu.PrefetchScalarGridSpec(
            num_scalar_prefetch=0,
            grid=(n_rows, n_k),
            in_specs=[
                a_spec,                                            # A tile (int8)
                pl.BlockSpec((n_pad, fp), lambda i, k: (0, 0)),    # resident X
                pl.BlockSpec((tm, 1), lambda i, k: (i, 0)),        # 1/deg (f32)
                pl.BlockSpec((fp, hp), lambda i, k: (0, 0)),       # W_l resident
                pl.BlockSpec((fp, hp), lambda i, k: (0, 0)),       # W_r resident
                pl.BlockSpec((1, hp), lambda i, k: (0, 0)),        # bias resident
            ],
            out_specs=pl.BlockSpec((tm, hp), lambda i, k: (i, 0)),
            scratch_shapes=[pltpu.VMEM((tm, fp), jnp.float32),     # neighbor-sum acc
                            pltpu.VMEM((tm, hp), jnp.float32)],    # root term
        ),
        compiler_params=pltpu.CompilerParams(
            dimension_semantics=("parallel", "arbitrary"),
            vmem_limit_bytes=vmem_limit,
        ),
        cost_estimate=pl.CostEstimate(
            flops=int(flops), transcendentals=0,
            bytes_accessed=int(bytes_accessed)),
    )(a_p, x_p, rdeg_p, w_l, w_r, bias)


# ---------------------------------------------------------------------------
# Glue (plain JAX): dense edge-count matrix + f32 reciprocal-degree vector.
# ---------------------------------------------------------------------------
def build_adjacency(edge_index, num_nodes):
    """PyG 'mean' aggregation over edges (multi-edges counted), deferred mean."""
    src, dst = edge_index[0], edge_index[1]
    counts = jnp.zeros((num_nodes, num_nodes), jnp.float32).at[dst, src].add(1.0)
    deg = counts.sum(axis=1, keepdims=True)
    rdeg = jnp.where(deg > 0, 1.0 / jnp.maximum(deg, 1.0), 0.0)
    return counts, rdeg


def graphsage_forward(x, edge_index, params):
    N, f_in = x.shape
    hidden = params["w1l"].shape[1]
    out_ch = params["w2l"].shape[1]

    n_pad, tm, tk = _choose_tiles(N)
    f_pad = _round_up(f_in, LANE)
    h_pad = _round_up(hidden, LANE)
    o_pad = _round_up(out_ch, LANE)

    counts, rdeg = build_adjacency(edge_index, N)
    # TODO(synk): int8 counts overflow past 127 parallel edges between one node pair.
    a_p = _pad2d(counts, n_pad, n_pad).astype(jnp.int8)       # exact 0/1/k counts
    rdeg_p = _pad2d(rdeg, n_pad, 1)                           # f32 (exact scaling)
    x_p = _pad2d(x, n_pad, f_pad).astype(jnp.bfloat16)

    w1l = _pad2d(params["w1l"], f_pad, h_pad).astype(jnp.bfloat16)
    w1r = _pad2d(params["w1r"], f_pad, h_pad).astype(jnp.bfloat16)
    b1 = _pad2d(params["b1"], 1, h_pad)                       # f32
    w2l = _pad2d(params["w2l"], h_pad, o_pad).astype(jnp.bfloat16)
    w2r = _pad2d(params["w2r"], h_pad, o_pad).astype(jnp.bfloat16)
    b2 = _pad2d(params["b2"], 1, o_pad)                       # f32

    # layer 1: SAGEConv -> ReLU  (Dropout is identity at inference)
    h = sage_layer(a_p, x_p, rdeg_p, w1l, w1r, b1, apply_relu=True,
                   out_dtype=jnp.bfloat16, tm=tm, tk=tk)
    # layer 2: SAGEConv
    out = sage_layer(a_p, h, rdeg_p, w2l, w2r, b2, apply_relu=False,
                     out_dtype=jnp.float32, tm=tm, tk=tk)
    return out[:N, :out_ch]


def reference_forward(x, edge_index, params):
    """Pure-JAX f32 reference of the same semantics."""
    counts, rdeg = build_adjacency(edge_index, x.shape[0])
    A = counts * rdeg
    h = (A @ x) @ params["w1l"] + x @ params["w1r"] + params["b1"]
    h = jnp.maximum(h, 0.0)
    return (A @ h) @ params["w2l"] + h @ params["w2r"] + params["b2"]


def init_params(key, f_in, hidden, out_ch):
    ks = jax.random.split(key, 4)

    def glorot(k, fan_in, fan_out):
        scale = jnp.sqrt(6.0 / (fan_in + fan_out))
        return jax.random.uniform(k, (fan_in, fan_out), jnp.float32, -scale, scale)

    return {
        "w1l": glorot(ks[0], f_in, hidden),
        "w1r": glorot(ks[1], f_in, hidden),
        "b1": jnp.zeros((1, hidden), jnp.float32),
        "w2l": glorot(ks[2], hidden, out_ch),
        "w2r": glorot(ks[3], hidden, out_ch),
        "b2": jnp.zeros((1, out_ch), jnp.float32),
    }


if __name__ == "__main__":
    key = jax.random.PRNGKey(0)
    k_x, k_e, k_p = jax.random.split(key, 3)

    # N=200 pads to 256 -> grid (2, 1): exercises >=2 parallel row tiles plus the
    # k==0 init / k==last finalize paths. (Tile sweeps belong at production N.)
    N, F_IN, HIDDEN, OUT, E = 200, 16, 32, 8, 600

    x = jax.random.normal(k_x, (N, F_IN), jnp.float32)
    edge_index = jax.random.randint(k_e, (2, E), 0, N, jnp.int32)
    params = init_params(k_p, F_IN, HIDDEN, OUT)

    out = graphsage_forward(x, edge_index, params)
    out = jax.block_until_ready(out)

    ref = reference_forward(x, edge_index, params)
    assert out.shape == (N, OUT)
    max_err = float(jnp.max(jnp.abs(out - ref)))
    # A counts and 1/deg are exact now; remaining error is bf16 X / weights on the MXU.
    assert jnp.allclose(out, ref, atol=5e-2, rtol=5e-2), max_err

    print("KERNEL_OK")
</pallas_src>

<mosaic_0001>
module attributes {stable_mosaic.version = 11 : i64} {
  func.func @sage_layer_kernel(%arg0: i32, %arg1: i32, %arg2: memref<128x256xi8, #tpu.memory_space<vmem>>, %arg3: memref<256x128xbf16, #tpu.memory_space<vmem>>, %arg4: memref<128x1xf32, #tpu.memory_space<vmem>>, %arg5: memref<128x128xbf16, #tpu.memory_space<vmem>>, %arg6: memref<128x128xbf16, #tpu.memory_space<vmem>>, %arg7: memref<1x128xf32, #tpu.memory_space<vmem>>, %arg8: memref<128x128xbf16, #tpu.memory_space<vmem>>, %arg9: memref<128x128xf32, #tpu.memory_space<vmem>>, %arg10: memref<128x128xf32, #tpu.memory_space<vmem>>) attributes {dimension_semantics = [#tpu.dimension_semantics<parallel>, #tpu.dimension_semantics<arbitrary>], iteration_bounds = array<i64: 2, 1>, scalar_prefetch = 0 : i64, scratch_operands = 2 : i64, tpu.core_type = #tpu.core_type<tc>, window_params = [{transform_indices = @transform_0, window_bounds = array<i64: 128, 256>}, {pipeline_mode = #tpu.pipeline_mode<synchronous>, transform_indices = @transform_1, window_bounds = array<i64: 256, 128>}, {transform_indices = @transform_2, window_bounds = array<i64: 128, 1>}, {pipeline_mode = #tpu.pipeline_mode<synchronous>, transform_indices = @transform_3, window_bounds = array<i64: 128, 128>}, {pipeline_mode = #tpu.pipeline_mode<synchronous>, transform_indices = @transform_4, window_bounds = array<i64: 128, 128>}, {pipeline_mode = #tpu.pipeline_mode<synchronous>, transform_indices = @transform_5, window_bounds = array<i64: 1, 128>}, {transform_indices = @transform_6, window_bounds = array<i64: 128, 128>}]} {
    %c0_i32 = arith.constant 0 : i32
    %0 = arith.cmpi eq, %arg1, %c0_i32 : i32
    %1 = arith.extui %0 : i1 to i32
    %c0_i32_0 = arith.constant 0 : i32
    %2 = arith.cmpi ne, %1, %c0_i32_0 : i32
    scf.if %2 {
      %cst_9 = arith.constant 0.000000e+00 : f32
      %16 = vector.broadcast %cst_9 : f32 to vector<128x128xf32>
      %c0_10 = arith.constant 0 : index
      %c0_11 = arith.constant 0 : index
      %17 = vector.load %arg9[%c0_10, %c0_11] : memref<128x128xf32, #tpu.memory_space<vmem>>, vector<128x128xf32>
      tpu.vector_store %arg9[%c0_10, %c0_11], %16 {strides = array<i32>} : memref<128x128xf32, #tpu.memory_space<vmem>>, vector<128x128xf32>,
      %c128_i32 = arith.constant 128 : i32
      %18 = arith.muli %arg0, %c128_i32 : i32
      %19 = tpu.assume_multiple %18, 128 : i32
      %20 = arith.index_cast %19 : i32 to index
      %c0_12 = arith.constant 0 : index
      %21 = vector.load %arg3[%20, %c0_12] : memref<256x128xbf16, #tpu.memory_space<vmem>>, vector<128x128xbf16>
      %c0_13 = arith.constant 0 : index
      %c0_14 = arith.constant 0 : index
      %22 = vector.load %arg6[%c0_13, %c0_14] : memref<128x128xbf16, #tpu.memory_space<vmem>>, vector<128x128xbf16>
      %cst_15 = arith.constant dense<0.000000e+00> : vector<128x128xf32>
      %23 = tpu.matmul %21, %22, %cst_15 {dimension_numbers = #tpu.dot_dimension_numbers<[1], [0], [0], [1], [0, 0, 1, 1], [], []>} : vector<128x128xbf16>, vector<128x128xbf16>, vector<128x128xf32> -> vector<128x128xf32>
      %c0_16 = arith.constant 0 : index
      %c0_17 = arith.constant 0 : index
      %24 = vector.load %arg7[%c0_16, %c0_17] : memref<1x128xf32, #tpu.memory_space<vmem>>, vector<1x128xf32>
      %25 = vector.broadcast %24 : vector<1x128xf32> to vector<128x128xf32>
      %26 = arith.addf %23, %25 : vector<128x128xf32>
      %c0_18 = arith.constant 0 : index
      %c0_19 = arith.constant 0 : index
      %27 = vector.load %arg10[%c0_18, %c0_19] : memref<128x128xf32, #tpu.memory_space<vmem>>, vector<128x128xf32>
      tpu.vector_store %arg10[%c0_18, %c0_19], %26 {strides = array<i32>} : memref<128x128xf32, #tpu.memory_space<vmem>>, vector<128x128xf32>,
    } else {
    }
    %c256_i32 = arith.constant 256 : i32
    %3 = arith.muli %arg1, %c256_i32 : i32
    %4 = tpu.assume_multiple %3, 256 : i32
    %5 = arith.index_cast %4 : i32 to index
    %c0 = arith.constant 0 : index
    %6 = vector.load %arg3[%5, %c0] : memref<256x128xbf16, #tpu.memory_space<vmem>>, vector<256x128xbf16>
    %c0_1 = arith.constant 0 : index
    %c0_2 = arith.constant 0 : index
    %7 = vector.load %arg9[%c0_1, %c0_2] : memref<128x128xf32, #tpu.memory_space<vmem>>, vector<128x128xf32>
    %c0_3 = arith.constant 0 : index
    %c0_4 = arith.constant 0 : index
    %8 = vector.load %arg2[%c0_3, %c0_4] : memref<128x256xi8, #tpu.memory_space<vmem>>, vector<128x256xi8>
    %9 = arith.sitofp %8 : vector<128x256xi8> to vector<128x256xbf16>
    %cst = arith.constant dense<0.000000e+00> : vector<128x128xf32>
    %10 = tpu.matmul %9, %6, %cst {dimension_numbers = #tpu.dot_dimension_numbers<[1], [0], [0], [1], [0, 0, 1, 1], [], []>} : vector<128x256xbf16>, vector<256x128xbf16>, vector<128x128xf32> -> vector<128x128xf32>
    %11 = arith.addf %7, %10 : vector<128x128xf32>
    %c0_5 = arith.constant 0 : index
    %c0_6 = arith.constant 0 : index
    %12 = vector.load %arg9[%c0_5, %c0_6] : memref<128x128xf32, #tpu.memory_space<vmem>>, vector<128x128xf32>
    tpu.vector_store %arg9[%c0_5, %c0_6], %11 {strides = array<i32>} : memref<128x128xf32, #tpu.memory_space<vmem>>, vector<128x128xf32>,
    %c0_i32_7 = arith.constant 0 : i32
    %13 = arith.cmpi eq, %arg1, %c0_i32_7 : i32
    %14 = arith.extui %13 : i1 to i32
    %c0_i32_8 = arith.constant 0 : i32
    %15 = arith.cmpi ne, %14, %c0_i32_8 : i32
    scf.if %15 {
      %c0_9 = arith.constant 0 : index
      %c0_10 = arith.constant 0 : index
      %16 = vector.load %arg9[%c0_9, %c0_10] : memref<128x128xf32, #tpu.memory_space<vmem>>, vector<128x128xf32>
      %c0_11 = arith.constant 0 : index
      %c0_12 = arith.constant 0 : index
      %17 = vector.load %arg4[%c0_11, %c0_12] : memref<128x1xf32, #tpu.memory_space<vmem>>, vector<128x1xf32>
      %18 = vector.broadcast %17 : vector<128x1xf32> to vector<128x128xf32>
      %19 = arith.mulf %16, %18 : vector<128x128xf32>
      %20 = arith.truncf %19 : vector<128x128xf32> to vector<128x128xbf16>
      %c0_13 = arith.constant 0 : index
      %c0_14 = arith.constant 0 : index
      %21 = vector.load %arg5[%c0_13, %c0_14] : memref<128x128xbf16, #tpu.memory_space<vmem>>, vector<128x128xbf16>
      %cst_15 = arith.constant dense<0.000000e+00> : vector<128x128xf32>
      %22 = tpu.matmul %20, %21, %cst_15 {dimension_numbers = #tpu.dot_dimension_numbers<[1], [0], [0], [1], [0, 0, 1, 1], [], []>} : vector<128x128xbf16>, vector<128x128xbf16>, vector<128x128xf32> -> vector<128x128xf32>
      %c0_16 = arith.constant 0 : index
      %c0_17 = arith.constant 0 : index
      %23 = vector.load %arg10[%c0_16, %c0_17] : memref<128x128xf32, #tpu.memory_space<vmem>>, vector<128x128xf32>
      %24 = arith.addf %22, %23 : vector<128x128xf32>
      %cst_18 = arith.constant 0.000000e+00 : f32
      %25 = vector.broadcast %cst_18 : f32 to vector<128x128xf32>
      %26 = arith.maximumf %24, %25 : vector<128x128xf32>
      %27 = arith.truncf %26 : vector<128x128xf32> to vector<128x128xbf16>
      %c0_19 = arith.constant 0 : index
      %c0_20 = arith.constant 0 : index
      %28 = vector.load %arg8[%c0_19, %c0_20] : memref<128x128xbf16, #tpu.memory_space<vmem>>, vector<128x128xbf16>
      tpu.vector_store %arg8[%c0_19, %c0_20], %27 {strides = array<i32>} : memref<128x128xbf16, #tpu.memory_space<vmem>>, vector<128x128xbf16>,
    } else {
    }
    return
  }
  func.func @transform_0(%arg0: i32, %arg1: i32) -> (i32, i32) {
    %c0_i32 = arith.constant 0 : i32
    return %arg0, %arg1 : i32, i32
  }
  func.func @transform_1(%arg0: i32, %arg1: i32) -> (i32, i32) {
    %c0_i32 = arith.constant 0 : i32
    %c0_i32_0 = arith.constant 0 : i32
    %c0_i32_1 = arith.constant 0 : i32
    return %c0_i32, %c0_i32_0 : i32, i32
  }
  func.func @transform_2(%arg0: i32, %arg1: i32) -> (i32, i32) {
    %c0_i32 = arith.constant 0 : i32
    %c0_i32_0 = arith.constant 0 : i32
    return %arg0, %c0_i32 : i32, i32
  }
  func.func @transform_3(%arg0: i32, %arg1: i32) -> (i32, i32) {
    %c0_i32 = arith.constant 0 : i32
    %c0_i32_0 = arith.constant 0 : i32
    %c0_i32_1 = arith.constant 0 : i32
    return %c0_i32, %c0_i32_0 : i32, i32
  }
  func.func @transform_4(%arg0: i32, %arg1: i32) -> (i32, i32) {
    %c0_i32 = arith.constant 0 : i32
    %c0_i32_0 = arith.constant 0 : i32
    %c0_i32_1 = arith.constant 0 : i32
    return %c0_i32, %c0_i32_0 : i32, i32
  }
  func.func @transform_5(%arg0: i32, %arg1: i32) -> (i32, i32) {
    %c0_i32 = arith.constant 0 : i32
    %c0_i32_0 = arith.constant 0 : i32
    %c0_i32_1 = arith.constant 0 : i32
    return %c0_i32, %c0_i32_0 : i32, i32
  }
  func.func @transform_6(%arg0: i32, %arg1: i32) -> (i32, i32) {
    %c0_i32 = arith.constant 0 : i32
    %c0_i32_0 = arith.constant 0 : i32
    return %arg0, %c0_i32 : i32, i32
  }
}

</mosaic_0001>

<bundles_post_ra>
// kernel: tpu_custom_call.1
= control target key start
LH: loop header
LB: loop body
LE: loop exit
PB: predicated region body
PF: predicated region fallthrough
CT: control target
= control target key end

     0   :  { %11 = vsyncpa [#allocation5], 0  ;;  %s2359_s0 = inlined_call_operand.vmem [shape: s8[256,256], index: 0, kind: input, shape index: {}]   ;;  %s2360_s1 = inlined_call_operand.vmem [shape: bf16[256,128], index: 1, kind: input, shape index: {}]   ;;  %s2361_s2 = inlined_call_operand.vmem [shape: f32[256,1], index: 2, kind: input, shape index: {}]   ;;  %s2362_s3 = inlined_call_operand.hbm [shape: bf16[128,128], index: 3, kind: input, shape index: {}]   ;;  %s2363_s4 = inlined_call_operand.hbm [shape: bf16[128,128], index: 4, kind: input, shape index: {}]   ;;  %s2364_s5 = inlined_call_operand.vmem [shape: f32[1,128], index: 5, kind: input, shape index: {}]   ;;  %s2365_s6 = inlined_call_operand.hbm [shape: bf16[256,128], index: 6, kind: output, shape index: {}]  }
   0x1   :  { %12 = vsyncpa [#allocation8], 0 }
   0x2   :  { %13 = vsyncpa [#allocation6], 0 }
   0x3   :  { %15 = vsyncpa [#allocation6 + $0x1], 0  ;;  %s2060_s21 = smov 0   ;;  %s2062_s22 = smov 0  }
   0x4   :  { %s2064_s23 = smov 0   ;;  %s2066_s24 = smov 0  }
   0x5   :  { %s2068_s25 = smov 0   ;;  %s2070_s26 = smov 0  }
   0x6 LB: > { %s1452_s27 = sadd.s32 4294967295, %s2015_s26   ;;  %s1453_s28 = sadd.s32 4294967294, %s2015_s26   ;;  %s2015_s26 = sphi %s2070_s26, %s21_s26   ;;  %s2011_s25 = sphi %s2068_s25, %s2378_s25   ;;  %s2007_s24 = sphi %s2066_s24, %s2377_s24   ;;  %s2003_s23 = sphi %s2064_s23, %s2376_s23   ;;  %s1999_s22 = sphi %s2062_s22, %s2375_s22   ;;  %s1995_s21 = sphi %s2060_s21, %s2374_s21  }
   0x7   : > { %s33_s29 = sadd.s32 1, %s2011_s25  ;;  %s178_s30 = sadd.s32 1, %s2003_s23 }
   0x8   : > { %p35_p0 = scmp.ge.s32.totalorder %s33_s29, 2  ;;  %p188_p1 = scmp.ne.s32.totalorder %s2003_s23, %s1999_s22 }
   0x9   : > { %p189_p2 = scmp.eq.s32.totalorder %s1452_s27, 1  ;;  %p194_p3 = scmp.ne.s32.totalorder %s1999_s22, %s1995_s21 }
   0xa   : > { %s2380_s29 = smov (%p35_p0, %s33_s29), 0  ;;  %p195_p5 = scmp.eq.s32.totalorder %s1453_s28, 1 }
   0xb   : > { %p2100_p4 = por %p189_p2, %p188_p1  ;;  %s175_s8 = ssub.s32 %s2011_s25, %s2380_s29 }
   0xc   : > { %p1454_p6 = scmp.ge.s32.totalorder %s2015_s26, 1  ;;  %p176_p7 = scmp.eq.s32.totalorder %s175_s8, 0 }
   0xd   : > { %s2367_s7 = scalar_select %p2100_p4, 1, 0 }
   0xe   : > { %p2107_p8 = por %p195_p5, %p194_p3  ;;  %p202_p9 = scmp.lt.s32.totalorder %s2015_s26, 3 }
   0xf   : > { %s2113_s10 = scalar_select %p176_p7, %s2003_s23, %s178_s30  }
  0x10   : > { %s2368_s9 = scalar_select %p2107_p8, 1, 0 }
  0x11   : > { %p2115_p10 = pnand %p1454_p6, %p202_p9  ;;  %p2119_p11 = scmp.eq.s32.totalorder %s1452_s27, 0 }
  0x12   : > { %s2017_s13 = smov [#allocation4]   ;;  %s2018_s16 = smov [#allocation7]  }
  0x13   : > { %p1766_p12 = pneg %p2115_p10  ;;  %s217_s14 = sshll.u32 %s2017_s13, 4  ;;  %s218_s14 = int_to_ptr.vmem [resolvable:$true] %s217_s14 }
  0x14   : > { %s230_s17 = sshll.u32 %s2018_s16, 4  ;;  %s1890_s18 = scalar_lea.vmem %s218_s14, 1024  ;;  %s231_s17 = int_to_ptr.vmem [resolvable:$true] %s230_s17 }
  0x15   : > { %p2127_p13 = pnand %p2119_p11, %p1766_p12  ;;  %p1891_p1 = scmp.ne.s32.totalorder %s218_s14, %s1890_s18 }
  0x16   : > { %p1898_p5 = scmp.lt.s32.totalorder %s218_s14, %s218_s14  ;;  %p1899_p6 = scmp.lt.s32.totalorder %s1890_s18, %s1890_s18 }
  0x17   : > { %p1881_p0 = pneg %p2127_p13 }
  0x18   : > { %p1900_p7 = por %p1899_p6, %p1898_p5 }
  0x19   : > { %p1893_p2 = pnand %p1891_p1, %p1881_p0 }
  0x1b   : > { %p1894_p3 = pneg %p1893_p2 }
  0x1d   : > { %p1901_p9 = pnand %p1900_p7, %p1894_p3 }
  0x1f   : > { %1904 = shalt.err (!%p1901_p9)
}
  0x20   : > { %s2019_s19 = smov 64   ;;  %s2020_s20 = smov 4  }
  0x21   : > { %1769 = dma.hbm_to_vmem [thread:$0]  (!%p2127_p13), %s2362_s3, 1024, %s218_s14, [#allocation5], %s2019_s19, %s2019_s19, %s2020_s20  }
  0x22   : > { %s1916_s30 = scalar_lea.vmem %s231_s17, 1024  ;;  %p1924_p8 = scmp.lt.s32.totalorder %s231_s17, %s231_s17 }
  0x23   : > { %p1917_p12 = scmp.ne.s32.totalorder %s231_s17, %s1916_s30  ;;  %p1925_p4 = scmp.lt.s32.totalorder %s1916_s30, %s1916_s30 }
  0x25   : > { %p1919_p1 = pnand %p1917_p12, %p1881_p0  ;;  %p1926_p5 = por %p1925_p4, %p1924_p8 }
  0x27   : > { %p1920_p2 = pneg %p1919_p1 }
  0x29   : > { %p1927_p3 = pnand %p1926_p5, %p1920_p2 }
  0x2b   : > { %1930 = shalt.err (!%p1927_p3)
}
  0x2c   : > { %1772 = dma.hbm_to_vmem [thread:$0]  (!%p2127_p13), %s2363_s4, 1024, %s231_s17, [#allocation8], %s2019_s19, %s2019_s19, %s2020_s20  }
  0x2d   : > { %273 = sbr.rel (%p2115_p10) target bundleno = 567 (0x237), region = 44 }
  0x32   : > { %1982 = dma.done.wait (%p2119_p11), [#allocation5], 1024  }
  0x33   : > { %1984 = vsyncadd (%p2119_p11), [#allocation5], 4294966272 }
  0x34   : > { %1986 = dma.done.wait (%p2119_p11), [#allocation8], 1024  }
  0x35   : > { %1988 = vsyncadd (%p2119_p11), [#allocation8], 4294966272  ;;  %v2021_v0 = vmov 0   ;;  %s1462_s14 = sshll.u32 %s2007_s24, 2  ;;  %v1839_v1 = vld [vmem:[%s2360_s1 + $0x78] sm:$0xff]   ;;  %s1465_s18 = sshll.u32 %s2007_s24, 4 }
  0x36   : > { %1837 = vset.pattern.permute.xlu0 %v2021_v0  ;;  %1838 = vset.pattern.permute.xlu1 %v2021_v0  ;;  %v1840_v2 = vld [vmem:[%s2360_s1 + $0x38] sm:$0xff]   ;;  %v1841_v3 = vld [vmem:[%s2360_s1 + $0x70] sm:$0xff]   ;;  %p319_p4 = scmp.lt.s32.totalorder %s1462_s14, 7  ;;  %v1843_v5 = vld [vmem:[%s2360_s1 + $0x68] sm:$0xff]   ;;  %p330_p8 = scmp.lt.s32.totalorder %s1465_s18, 31 }
  0x37   : > { %1612 = vmatprep.subr.bf16.mxu1 %v1839_v1  ;;  %v1842_v4 = vld [vmem:[%s2360_s1 + $0x30] sm:$0xff]   ;;  %v1844_v6 = vld [vmem:[%s2360_s1 + $0x28] sm:$0xff]   ;;  %v1845_v7 = vld [vmem:[%s2360_s1 + $0x60] sm:$0xff]   ;;  %s1467_s28 = sshll.u32 %s2007_s24, 7  ;;  %s1548_s11 = sshll.u32 %s2007_s24, 10 }
  0x38   : > { %1613 = vmatpush3.bf16.msra.mxu1 %v1840_v2  ;;  %s2382_s14 = smov (!%p319_p4, %s1462_s14), 7  ;;  %s2384_s18 = smov (!%p330_p8, %s1465_s18), 31  ;;  %v1846_v8 = vld [vmem:[%s2360_s1 + $0x20] sm:$0xff]   ;;  %v1847_v9 = vld [vmem:[%s2360_s1 + $0x58] sm:$0xff]   ;;  %v1849_v11 = vld [vmem:[%s2360_s1 + $0x50] sm:$0xff]  }
  0x39   : > { %1614 = vmatprep.subr.bf16.mxu1 %v1841_v3  ;;  %s1531_s16 = sshll.u32 %s2382_s14, 4  ;;  %s1466_s27 = sshll.u32 %s2384_s18, 3  ;;  %v1848_v10 = vld [vmem:[%s2360_s1 + $0x18] sm:$0xff]   ;;  %v1850_v15 = vld [vmem:[%s2360_s1 + $0x10] sm:$0xff]   ;;  %v1851_v17 = vld [vmem:[%s2360_s1 + $0x48] sm:$0xff]  }
  0x3a   : > { %s2191_s8 = scalar_lea.vmem %s2359_s0, %s1531_s16  ;;  %s2199_s17 = scalar_lea.vmem %s2361_s2, %s1466_s27  ;;  %v1852_v20 = vld [vmem:[%s2360_s1 + $0x8] sm:$0xff]   ;;  %v1853_v21 = vld [vmem:[%s2360_s1 + $0x40] sm:$0xff]   ;;  %v1855_v23 = vld [vmem:[#allocation7 + $0x38] sm:$0xff]  }
  0x3b   : > { %v664_v12 = vld [vmem:[%s2191_s8 + $0x8] sm:$0xff]  ;;  %v931_v14 = vld [vmem:[%s2199_s17] sm:$0xff]  ;;  %v933_v16 = vld [vmem:[%s2199_s17 + $0x10] sm:$0xff]  ;;  %s358_s15 = sshra.s32 %s1467_s28, 3  ;;  %1692 = vmatprep.subr.bf16.mxu0 %v1855_v23  ;;  %s314_s28 = sand.u32 1, %s1999_s22  }
  0x3c   : > { %1615 = vmatpush3.bf16.msra.mxu1 %v1842_v4  ;;  %v672_v13 = vunpack.c.l.s8.bf16 %v664_v12  ;;  %949 = vperm.xlu0 %1837, %v931_v14   ;;  %v932_v18 = vld [vmem:[%s2199_s17 + $0x8] sm:$0xff]  ;;  %v934_v19 = vld [vmem:[%s2199_s17 + $0x18] sm:$0xff]  ;;  %v935_v22 = vld [vmem:[%s2199_s17 + $0x20] sm:$0xff]  ;;  %s1468_s19 = sshll.u32 %s358_s15, 2  ;;  %v674_v32 = vunpack.c.h.s8.bf16 %v664_v12  ;;  %s1461_s30 = sshll.u32 %s314_s28, 6 }
  0x3d   : > { %1616 = vmatprep.subr.bf16.mxu1 %v1843_v5  ;;  %959 = vperm.xlu1 %1838, %v933_v16   ;;  %v1854_v24 = vld [vmem:[%s2360_s1] sm:$0xff]   ;;  %v1856_v25 = vld [vmem:[#allocation7 + $0x30] sm:$0xff]   ;;  %v936_v26 = vld [vmem:[%s2199_s17 + $0x28] sm:$0xff]  ;;  %s2232_s27 = scalar_lea.vmem %s2360_s1, %s1468_s19  ;;  %s2277_s14 = scalar_lea.vmem [#allocation9], %s1461_s30 }
  0x3e   : > { %815 = vmatprep.mubr.bf16.mxu1 %v672_v13  ;;  %v663_v27 = vld [vmem:[%s2191_s8] sm:$0xff]  ;;  %1693 = vmatpush3.bf16.msra.mxu0 %v1855_v23  ;;  %v1857_v28 = vld [vmem:[#allocation7 + $0x28] sm:$0xff]   ;;  %v937_v29 = vld [vmem:[%s2199_s17 + $0x30] sm:$0xff]  ;;  %s1338_s13 = sshll.u32 %s2277_s14, 4  ;;  %s2308_s16 = scalar_lea.hbm %s2365_s6, %s1548_s11  ;;  %s2303_s13 = int_to_ptr.vmem [resolvable:$true] %s1338_s13 }
  0x3f   : > { %1694 = vmatprep.subr.bf16.mxu0 %v1856_v25  ;;  %v671_v30 = vunpack.c.l.s8.bf16 %v663_v27  ;;  %v938_v31 = vld [vmem:[%s2199_s17 + $0x38] sm:$0xff]  ;;  %v1858_v33 = vld [vmem:[#allocation7 + $0x20] sm:$0xff]   ;;  %v940_v37 = vld [vmem:[%s2199_s17 + $0x48] sm:$0xff]  ;;  %v673_v41 = vunpack.c.h.s8.bf16 %v663_v27  ;;  %s2314_s19 = scalar_lea.sflag [#allocation6], %s314_s28  ;;  %s1931_s24 = scalar_lea.vmem %s2303_s13, 1024 }
  0x40   : > { %1617 = vmatpush3.bf16.msra.mxu1 %v1844_v6  ;;  %954 = vperm.xlu0 %1837, %v932_v18   ;;  %v1863_v34 = vld [vmem:[%s2232_s27] sm:$0xff]   ;;  %v666_v36 = vld [vmem:[%s2191_s8 + $0x18] sm:$0xff]  ;;  %v941_v38 = vld [vmem:[%s2199_s17 + $0x50] sm:$0xff]  ;;  %p1932_p10 = scmp.ne.s32.totalorder %s2303_s13, %s1931_s24  ;;  %p2372_p11 = scmp.ne.s32.totalorder %s2367_s7, 0 }
  0x41   : > { %1618 = vmatprep.subr.bf16.mxu1 %v1845_v7  ;;  %964 = vperm.xlu1 %1838, %v934_v19   ;;  %v939_v35 = vld [vmem:[%s2199_s17 + $0x40] sm:$0xff]  ;;  %v1859_v39 = vld [vmem:[#allocation7 + $0x18] sm:$0xff]   ;;  %v1860_v42 = vld [vmem:[#allocation7 + $0x10] sm:$0xff]   ;;  %v676_v43 = vunpack.c.l.s8.bf16 %v666_v36  ;;  %v678_v51 = vunpack.c.h.s8.bf16 %v666_v36  ;;  %s2022_s20 = smov [#allocation9]  }
  0x42   : > { %1695 = vmatpush3.bf16.msra.mxu0 %v1856_v25  ;;  %1708 = vmatprep.mubr.bf16.mxu0 %v1863_v34  ;;  %v942_v40 = vld [vmem:[%s2199_s17 + $0x58] sm:$0xff]  ;;  %v943_v44 = vld [vmem:[%s2199_s17 + $0x60] sm:$0xff]  ;;  %v944_v45 = vld [vmem:[%s2199_s17 + $0x68] sm:$0xff]  ;;  %p1933_p13 = pnand %p1932_p10, %p2372_p11  ;;  %s1935_s12 = sshll.u32 %s2022_s20, 4  ;;  %s1936_s12 = int_to_ptr.vmem [resolvable:$false] %s1935_s12 }
  0x43   : > { %1696 = vmatprep.subr.bf16.mxu0 %v1857_v28  ;;  %v665_v46 = vld [vmem:[%s2191_s8 + $0x10] sm:$0xff]  ;;  %v1861_v47 = vld [vmem:[#allocation7 + $0x8] sm:$0xff]   ;;  %v946_v50 = vld [vmem:[%s2199_s17 + $0x78] sm:$0xff]  ;;  %p1938_p6 = scmp.lt.s32.totalorder %s2303_s13, %s1936_s12 }
  0x44   : > { %1619 = vmatpush3.bf16.msra.mxu1 %v1846_v8  ;;  %969 = vperm.xlu0 %1837, %v935_v22   ;;  %v945_v48 = vld [vmem:[%s2199_s17 + $0x70] sm:$0xff]  ;;  %v675_v49 = vunpack.c.l.s8.bf16 %v665_v46  ;;  %v1862_v52 = vld [vmem:[#allocation7] sm:$0xff]   ;;  %v668_v53 = vld [vmem:[%s2191_s8 + $0x28] sm:$0xff]  ;;  %v677_v55 = vunpack.c.h.s8.bf16 %v665_v46  ;;  %p1934_p0 = pneg %p1933_p13 }
  0x45   : > { %1620 = vmatprep.subr.bf16.mxu1 %v1847_v9  ;;  %974 = vperm.xlu1 %1838, %v936_v26   ;;  %v1865_v54 = vld [vmem:[#allocation4 + $0x38] sm:$0xff]   ;;  %v1864_v56 = vld [vmem:[%s2232_s27 + $0x8] sm:$0xff]   ;;  %v680_v57 = vunpack.c.l.s8.bf16 %v668_v53  ;;  %v1866_v58 = vld [vmem:[#allocation4 + $0x30] sm:$0xff]   ;;  %v682_v0 = vunpack.c.h.s8.bf16 %v668_v53 }
  0x46   : > { %1697 = vmatpush3.bf16.msra.mxu0 %v1857_v28  ;;  %v1867_v59 = vld [vmem:[%s2232_s27 + $0x10] sm:$0xff]   ;;  %v667_v60 = vld [vmem:[%s2191_s8 + $0x20] sm:$0xff]  ;;  %v1869_v61 = vld [vmem:[#allocation4 + $0x28] sm:$0xff]  }
  0x47   : > { %1698 = vmatprep.subr.bf16.mxu0 %v1858_v33  ;;  %v679_v62 = vunpack.c.l.s8.bf16 %v667_v60  ;;  %v1868_v63 = vld [vmem:[%s2232_s27 + $0x18] sm:$0xff]   ;;  %v681_v2 = vunpack.c.h.s8.bf16 %v667_v60  ;;  %v669_v4 = vld [vmem:[%s2191_s8 + $0x30] sm:$0xff]  ;;  %v1870_v8 = vld [vmem:[#allocation4 + $0x20] sm:$0xff]  }
  0x48   : > { %1621 = vmatpush3.bf16.msra.mxu1 %v1848_v10  ;;  %979 = vperm.xlu0 %1837, %v937_v29   ;;  %v670_v1 = vld [vmem:[%s2191_s8 + $0x38] sm:$0xff]  ;;  %v683_v5 = vunpack.c.l.s8.bf16 %v669_v4  ;;  %v685_v7 = vunpack.c.h.s8.bf16 %v669_v4  ;;  %v1871_v9 = vld [vmem:[%s2232_s27 + $0x20] sm:$0xff]   ;;  %v1872_v10 = vld [vmem:[%s2232_s27 + $0x28] sm:$0xff]  }
  0x49   : > { %1622 = vmatprep.subr.bf16.mxu1 %v1849_v11  ;;  %984 = vperm.xlu1 %1838, %v938_v31   ;;  %v684_v3 = vunpack.c.l.s8.bf16 %v670_v1  ;;  %v686_v6 = vunpack.c.h.s8.bf16 %v670_v1  ;;  %v1873_v11 = vld [vmem:[#allocation4 + $0x18] sm:$0xff]   ;;  %v1874_v12 = vld [vmem:[#allocation4 + $0x10] sm:$0xff]   ;;  %v1878_v16 = vld [vmem:[#allocation4] sm:$0xff]  }
  0x4a   : > { %1699 = vmatpush3.bf16.msra.mxu0 %v1858_v33  ;;  %v1875_v13 = vld [vmem:[%s2232_s27 + $0x30] sm:$0xff]   ;;  %v1876_v14 = vld [vmem:[%s2232_s27 + $0x38] sm:$0xff]   ;;  %s1937_s27 = scalar_lea.vmem %s1936_s12, 2048 }
  0x4b   : > { %1700 = vmatprep.subr.bf16.mxu0 %v1859_v39  ;;  %p1939_p7 = scmp.lt.s32.totalorder %s1937_s27, %s1931_s24 }
  0x4c   : > { %1623 = vmatpush3.bf16.msra.mxu1 %v1850_v15  ;;  %989 = vperm.xlu0 %1837, %v939_v35   ;;  %v1877_v15 = vld [vmem:[#allocation4 + $0x8] sm:$0xff]  }
  0x4d   : > { %1624 = vmatprep.subr.bf16.mxu1 %v1851_v17  ;;  %994 = vperm.xlu1 %1838, %v940_v37   ;;  %p1940_p9 = por %p1939_p7, %p1938_p6 }
  0x4e   : > { %1701 = vmatpush3.bf16.msra.mxu0 %v1859_v39 }
  0x4f   : > { %1702 = vmatprep.subr.bf16.mxu0 %v1860_v42  ;;  %p1941_p12 = pnand %p1940_p9, %p1934_p0 }
  0x50   : > { %1625 = vmatpush3.bf16.msra.mxu1 %v1852_v20  ;;  %999 = vperm.xlu0 %1837, %v941_v38  }
  0x51   : > { %1626 = vmatprep.subr.bf16.mxu1 %v1853_v21  ;;  %1004 = vperm.xlu1 %1838, %v942_v40  }
  0x52   : > { %1703 = vmatpush3.bf16.msra.mxu0 %v1860_v42 }
  0x53   : > { %1704 = vmatprep.subr.bf16.mxu0 %v1861_v47 }
  0x54   : > { %1627 = vmatpush3.bf16.msra.mxu1 %v1854_v24  ;;  %1009 = vperm.xlu0 %1837, %v943_v44  }
  0x55   : > { %1014 = vperm.xlu1 %1838, %v944_v45  }
  0x56   : > { %1705 = vmatpush3.bf16.msra.mxu0 %v1861_v47 }
  0x57   : > { %816 = vmatmul.mubr.bf16.vlgmr.msra.gmra.mxu1 %v671_v30  ;;  %1706 = vmatprep.subr.bf16.mxu0 %v1862_v52 }
  0x58   : > { %823 = vmatprep.mubr.bf16.mxu1 %v674_v32  ;;  %1019 = vperm.xlu0 %1837, %v945_v48  }
  0x59   : > { %1024 = vperm.xlu1 %1838, %v946_v50  }
  0x5a   : > { %1707 = vmatpush3.bf16.msra.mxu0 %v1862_v52 }
  0x5b   : > { %1724 = vmatprep.subr.bf16.mxu0 %v1865_v54 }
  0x5d   : > { %1709 = vmatmul.mubr.bf16.vlgmr.msra.gmra.mxu0 %v1864_v56 }
  0x5e   : > { %1725 = vmatpush3.bf16.msra.mxu0 %v1865_v54  ;;  %1712 = vmatprep.mubr.bf16.mxu0 %v1867_v59 }
  0x5f   : > { %824 = vmatmul.mubr.bf16.gmra.mxu1 %v673_v41  ;;  %1726 = vmatprep.subr.bf16.mxu0 %v1866_v58 }
  0x60   : > { %831 = vmatprep.mubr.bf16.mxu1 %v676_v43 }
  0x62   : > { %1727 = vmatpush3.bf16.msra.mxu0 %v1866_v58 }
  0x63   : > { %1728 = vmatprep.subr.bf16.mxu0 %v1869_v61 }
  0x65   : > { %1713 = vmatmul.mubr.bf16.gmra.mxu0 %v1868_v63 }
  0x66   : > { %1729 = vmatpush3.bf16.msra.mxu0 %v1869_v61  ;;  %1716 = vmatprep.mubr.bf16.mxu0 %v1871_v9 }
  0x67   : > { %832 = vmatmul.mubr.bf16.gmra.mxu1 %v675_v49  ;;  %1730 = vmatprep.subr.bf16.mxu0 %v1870_v8 }
  0x68   : > { %839 = vmatprep.mubr.bf16.mxu1 %v678_v51 }
  0x6a   : > { %1731 = vmatpush3.bf16.msra.mxu0 %v1870_v8 }
  0x6b   : > { %1732 = vmatprep.subr.bf16.mxu0 %v1873_v11 }
  0x6d   : > { %1717 = vmatmul.mubr.bf16.gmra.mxu0 %v1872_v10 }
  0x6e   : > { %1733 = vmatpush3.bf16.msra.mxu0 %v1873_v11  ;;  %1720 = vmatprep.mubr.bf16.mxu0 %v1875_v13 }
  0x6f   : > { %840 = vmatmul.mubr.bf16.gmra.mxu1 %v677_v55  ;;  %1734 = vmatprep.subr.bf16.mxu0 %v1874_v12 }
  0x70   : > { %847 = vmatprep.mubr.bf16.mxu1 %v680_v57 }
  0x72   : > { %1735 = vmatpush3.bf16.msra.mxu0 %v1874_v12 }
  0x73   : > { %1736 = vmatprep.subr.bf16.mxu0 %v1877_v15 }
  0x75   : > { %1721 = vmatmul.mubr.bf16.gmra.mxu0 %v1876_v14 }
  0x76   : > { %1737 = vmatpush3.bf16.msra.mxu0 %v1877_v15 }
  0x77   : > { %848 = vmatmul.mubr.bf16.gmra.mxu1 %v679_v62  ;;  %1738 = vmatprep.subr.bf16.mxu0 %v1878_v16 }
  0x78   : > { %855 = vmatprep.mubr.bf16.mxu1 %v682_v0 }
  0x7a   : > { %1739 = vmatpush3.bf16.msra.mxu0 %v1878_v16 }
  0x7f   : > { %856 = vmatmul.mubr.bf16.gmra.mxu1 %v681_v2 }
  0x80   : > { %863 = vmatprep.mubr.bf16.mxu1 %v684_v3 }
  0x87   : > { %864 = vmatmul.mubr.bf16.gmra.mxu1 %v683_v5 }
  0x88   : > { %871 = vmatprep.mubr.bf16.mxu1 %v686_v6 }
  0x8f   : > { %872 = vmatmul.mubr.bf16.gmra.mxu1 %v685_v7 }
  0xb7   : > { %v950_v18 = vpop.permute.xlu0 %949 }
  0xb8   : > { %v960_v28 = vpop.permute.xlu1 %959 }
  0xbb   : > { %v955_v23 = vpop.permute.xlu0 %954 }
  0xbc   : > { %v965_v35 = vpop.permute.xlu1 %964 }
  0xbf   : > { %v970_v44 = vpop.permute.xlu0 %969 }
  0xc0   : > { %v975_v46 = vpop.permute.xlu1 %974 }
  0xc3   : > { %v980_v55 = vpop.permute.xlu0 %979 }
  0xc4   : > { %v985_v57 = vpop.permute.xlu1 %984 }
  0xc7   : > { %v990_v2 = vpop.permute.xlu0 %989 }
  0xc8   : > { %v995_v4 = vpop.permute.xlu1 %994 }
  0xcb   : > { %v1000_v13 = vpop.permute.xlu0 %999 }
  0xcc   : > { %v1005_v15 = vpop.permute.xlu1 %1004 }
 0x117   : > { %v1628_v17 = vpop.f32.mrf.mxu1 }
 0x119   : > { %v1629_v19 = vpop.f32.mrf.mxu1 }
 0x11a   : > { %v1630_v21 = vadd.f32 %v1629_v19, %v1628_v17 }
 0x11b   : > { %v1631_v20 = vpop.f32.mrf.mxu1 }
 0x11c   : > { %v1027_v26 = vmul.f32 %v1630_v21, %v950_v18 }
 0x11d   : > { %v1632_v22 = vpop.f32.mrf.mxu1 }
 0x11e   : > { %v1633_v24 = vadd.f32 %v1632_v22, %v1631_v20 }
 0x11f   : > { %v1634_v25 = vpop.f32.mrf.mxu1 }
 0x120   : > { %v1028_v27 = vmul.f32 %v1633_v24, %v955_v23  ;;  %v1010_v24 = vpop.permute.xlu0 %1009 }
 0x121   : > { %v1635_v29 = vpop.f32.mrf.mxu1 }
 0x122   : > { %v1043_v30 = vpack.c.bf16 %v1028_v27, %v1027_v26  ;;  %v1636_v32 = vadd.f32 %v1635_v29, %v1634_v25  ;;  %v1015_v26 = vpop.permute.xlu1 %1014 }
 0x123   : > { %v1637_v31 = vpop.f32.mrf.mxu1 }
 0x124   : > { %1740 = vmatprep.mubr.bf16.mxu0 %v1043_v30  ;;  %v1029_v37 = vmul.f32 %v1636_v32, %v960_v28 }
 0x125   : > { %v1638_v33 = vpop.f32.mrf.mxu1 }
 0x126   : > { %v1639_v34 = vadd.f32 %v1638_v33, %v1637_v31 }
 0x127   : > { %v1640_v36 = vpop.f32.mrf.mxu1 }
 0x128   : > { %v1030_v38 = vmul.f32 %v1639_v34, %v965_v35 }
 0x129   : > { %v1641_v39 = vpop.f32.mrf.mxu1 }
 0x12a   : > { %v1044_v40 = vpack.c.bf16 %v1030_v38, %v1029_v37  ;;  %v1642_v42 = vadd.f32 %v1641_v39, %v1640_v36  ;;  %v1020_v36 = vpop.permute.xlu0 %1019  ;;  %v1025_v37 = vpop.permute.xlu1 %1024 }
 0x12b   : > { %v1643_v41 = vpop.f32.mrf.mxu1 }
 0x12c   : > { %1741 = vmatmul.mubr.bf16.vlgmr.msra.gmra.mxu0 %v1044_v40  ;;  %v1031_v48 = vmul.f32 %v1642_v42, %v970_v44 }
 0x12d   : > { %v1644_v43 = vpop.f32.mrf.mxu1 }
 0x12e   : > { %v1645_v45 = vadd.f32 %v1644_v43, %v1643_v41  ;;  %v1710_v41 = vpop.f32.mrf.mxu0 }
 0x12f   : > { %v1646_v47 = vpop.f32.mrf.mxu1 }
 0x130   : > { %v1032_v49 = vmul.f32 %v1645_v45, %v975_v46  ;;  %v531_v42 = vpop.f32.mrf.mxu0 }
 0x131   : > { %v1647_v50 = vpop.f32.mrf.mxu1 }
 0x132   : > { %v1045_v51 = vpack.c.bf16 %v1032_v49, %v1031_v48  ;;  %v1648_v53 = vadd.f32 %v1647_v50, %v1646_v47  ;;  %v1711_v43 = vpop.f32.mrf.mxu0 }
 0x133   : > { %v1649_v52 = vpop.f32.mrf.mxu1 }
 0x134   : > { %1744 = vmatprep.mubr.bf16.mxu0 %v1045_v51  ;;  %v1033_v59 = vmul.f32 %v1648_v53, %v980_v55  ;;  %v534_v44 = vpop.f32.mrf.mxu0 }
 0x135   : > { %v1650_v54 = vpop.f32.mrf.mxu1 }
 0x136   : > { %v1651_v56 = vadd.f32 %v1650_v54, %v1649_v52  ;;  %v1714_v45 = vpop.f32.mrf.mxu0 }
 0x137   : > { %v1652_v58 = vpop.f32.mrf.mxu1 }
 0x138   : > { %v1034_v60 = vmul.f32 %v1651_v56, %v985_v57  ;;  %v547_v46 = vpop.f32.mrf.mxu0  ;;  %v2268_v57 = vld [vmem:[%s2364_s5] ss:$0 sm:$0xff] }
 0x139   : > { %v1653_v61 = vpop.f32.mrf.mxu1 }
 0x13a   : > { %v1046_v62 = vpack.c.bf16 %v1034_v60, %v1033_v59  ;;  %v1654_v0 = vadd.f32 %v1653_v61, %v1652_v58  ;;  %v1715_v47 = vpop.f32.mrf.mxu0  ;;  %v540_v59 = vadd.f32 %v1710_v41, %v2268_v57  ;;  %v532_v61 = vadd.f32 %v2268_v57, %v531_v42 }
 0x13b   : > { %v1655_v63 = vpop.f32.mrf.mxu1 }
 0x13c   : > { %1745 = vmatmul.mubr.bf16.gmra.mxu0 %v1046_v62  ;;  %v1035_v6 = vmul.f32 %v1654_v0, %v990_v2  ;;  %v550_v48 = vpop.f32.mrf.mxu0  ;;  %v543_v62 = vadd.f32 %v1711_v43, %v2268_v57 }
 0x13d   : > { %v1656_v1 = vpop.f32.mrf.mxu1 }
 0x13e   : > { %v1657_v3 = vadd.f32 %v1656_v1, %v1655_v63  ;;  %v1718_v49 = vpop.f32.mrf.mxu0  ;;  %v535_v1 = vadd.f32 %v2268_v57, %v534_v44 }
 0x13f   : > { %v1658_v5 = vpop.f32.mrf.mxu1 }
 0x140   : > { %v1036_v7 = vmul.f32 %v1657_v3, %v995_v4  ;;  %v563_v50 = vpop.f32.mrf.mxu0 }
 0x141   : > { %v1659_v8 = vpop.f32.mrf.mxu1 }
 0x142   : > { %v1047_v9 = vpack.c.bf16 %v1036_v7, %v1035_v6  ;;  %v1660_v11 = vadd.f32 %v1659_v8, %v1658_v5  ;;  %v1719_v51 = vpop.f32.mrf.mxu0 }
 0x143   : > { %v1661_v10 = vpop.f32.mrf.mxu1 }
 0x144   : > { %1748 = vmatprep.mubr.bf16.mxu0 %v1047_v9  ;;  %v1037_v17 = vmul.f32 %v1660_v11, %v1000_v13  ;;  %v566_v52 = vpop.f32.mrf.mxu0  ;;  %v556_v13 = vadd.f32 %v1714_v45, %v2268_v57 }
 0x145   : > { %v1662_v12 = vpop.f32.mrf.mxu1 }
 0x146   : > { %v1663_v14 = vadd.f32 %v1662_v12, %v1661_v10  ;;  %v2257_v53 = vpop.f32.mrf.mxu0 }
 0x147   : > { %v1664_v16 = vpop.f32.mrf.mxu1 }
 0x148   : > { %v1038_v18 = vmul.f32 %v1663_v14, %v1005_v15  ;;  %v2259_v54 = vpop.f32.mrf.mxu0  ;;  %v548_v15 = vadd.f32 %v2268_v57, %v547_v46 }
 0x149   : > { %v1665_v19 = vpop.f32.mrf.mxu1 }
 0x14a   : > { %v1048_v20 = vpack.c.bf16 %v1038_v18, %v1037_v17  ;;  %v1666_v22 = vadd.f32 %v1665_v19, %v1664_v16  ;;  %v2261_v55 = vpop.f32.mrf.mxu0  ;;  %v559_v16 = vadd.f32 %v1715_v47, %v2268_v57  ;;  %v551_v19 = vadd.f32 %v2268_v57, %v550_v48 }
 0x14b   : > { %v1667_v21 = vpop.f32.mrf.mxu1 }
 0x14c   : > { %1749 = vmatmul.mubr.bf16.gmra.mxu0 %v1048_v20  ;;  %v1039_v28 = vmul.f32 %v1666_v22, %v1010_v24  ;;  %v2263_v56 = vpop.f32.mrf.mxu0 }
 0x14d   : > { %v1668_v23 = vpop.f32.mrf.mxu1 }
 0x14e   : > { %v1669_v25 = vadd.f32 %v1668_v23, %v1667_v21 }
 0x14f   : > { %v1670_v27 = vpop.f32.mrf.mxu1 }
 0x150   : > { %v1040_v29 = vmul.f32 %v1669_v25, %v1015_v26 }
 0x151   : > { %v1671_v30 = vpop.f32.mrf.mxu1 }
 0x152   : > { %v1049_v31 = vpack.c.bf16 %v1040_v29, %v1039_v28  ;;  %v1672_v33 = vadd.f32 %v1671_v30, %v1670_v27 }
 0x153   : > { %v1673_v32 = vpop.f32.mrf.mxu1 }
 0x154   : > { %1752 = vmatprep.mubr.bf16.mxu0 %v1049_v31  ;;  %v1041_v38 = vmul.f32 %v1672_v33, %v1020_v36  ;;  %v572_v31 = vadd.f32 %v1718_v49, %v2268_v57  ;;  %v564_v33 = vadd.f32 %v2268_v57, %v563_v50  ;;  %v588_v49 = vadd.f32 %v2257_v53, %v2268_v57 }
 0x155   : > { %v1674_v34 = vpop.f32.mrf.mxu1 }
 0x156   : > { %v1675_v35 = vadd.f32 %v1674_v34, %v1673_v32  ;;  %v575_v34 = vadd.f32 %v1719_v51, %v2268_v57  ;;  %v580_v51 = vadd.f32 %v2268_v57, %v2259_v54 }
 0x158   : > { %v1042_v39 = vmul.f32 %v1675_v35, %v1025_v37  ;;  %v567_v37 = vadd.f32 %v2268_v57, %v566_v52  ;;  %v591_v52 = vadd.f32 %v2261_v55, %v2268_v57 }
 0x15a   : > { %v1050_v40 = vpack.c.bf16 %v1042_v39, %v1041_v38 }
 0x15c   : > { %1753 = vmatmul.mubr.bf16.gmra.mxu0 %v1050_v40 }
 0x1ec   : > { %v1742_v58 = vpop.f32.mrf.mxu0 }
 0x1ed   : > { %v1174_v63 = vadd.f32 %v1742_v58, %v540_v59 }
 0x1ee   : > { %v1165_v60 = vpop.f32.mrf.mxu0 }
 0x1ef   : > { %v1166_v2 = vadd.f32 %v1165_v60, %v532_v61  ;;  %v1230_v5 = vmax.f32 %v1174_v63, 0.0  ;;  %v583_v60 = vadd.f32 %v2268_v57, %v2263_v56 }
 0x1f0   : > { %v1743_v0 = vpop.f32.mrf.mxu0 }
 0x1f1   : > { %v1177_v3 = vadd.f32 %v1743_v0, %v543_v62  ;;  %v1228_v8 = vmax.f32 %v1166_v2, 0.0 }
 0x1f2   : > { %v1168_v4 = vpop.f32.mrf.mxu0 }
 0x1f3   : > { %v1231_v6 = vmax.f32 %v1177_v3, 0.0  ;;  %v1169_v7 = vadd.f32 %v1168_v4, %v535_v1 }
 0x1f5   : > { %v1557_v9 = vpack.c.bf16 %v1231_v6, %v1230_v5  ;;  %v1229_v10 = vmax.f32 %v1169_v7, 0.0 }
 0x1f7   : > { %1589 = vst [vmem:[%s2277_s14 + $0x8] sm:$0xff] %v1557_v9   ;;  %v1552_v11 = vpack.c.bf16 %v1229_v10, %v1228_v8 }
 0x1f9   : > { %1553 = vst [vmem:[%s2277_s14] sm:$0xff] %v1552_v11  }
 0x1fc   : > { %v1746_v12 = vpop.f32.mrf.mxu0 }
 0x1fd   : > { %v1190_v17 = vadd.f32 %v1746_v12, %v556_v13 }
 0x1fe   : > { %v1181_v14 = vpop.f32.mrf.mxu0 }
 0x1ff   : > { %v1182_v20 = vadd.f32 %v1181_v14, %v548_v15  ;;  %v1234_v23 = vmax.f32 %v1190_v17, 0.0 }
 0x200   : > { %v1747_v18 = vpop.f32.mrf.mxu0 }
 0x201   : > { %v1193_v21 = vadd.f32 %v1747_v18, %v559_v16  ;;  %v1232_v26 = vmax.f32 %v1182_v20, 0.0 }
 0x202   : > { %v1184_v22 = vpop.f32.mrf.mxu0 }
 0x203   : > { %v1235_v24 = vmax.f32 %v1193_v21, 0.0  ;;  %v1185_v25 = vadd.f32 %v1184_v22, %v551_v19 }
 0x205   : > { %v1567_v27 = vpack.c.bf16 %v1235_v24, %v1234_v23  ;;  %v1233_v28 = vmax.f32 %v1185_v25, 0.0 }
 0x207   : > { %1591 = vst [vmem:[%s2277_s14 + $0x18] sm:$0xff] %v1567_v27   ;;  %v1562_v29 = vpack.c.bf16 %v1233_v28, %v1232_v26 }
 0x209   : > { %1590 = vst [vmem:[%s2277_s14 + $0x10] sm:$0xff] %v1562_v29  }
 0x20c   : > { %v1750_v30 = vpop.f32.mrf.mxu0 }
 0x20d   : > { %v1206_v35 = vadd.f32 %v1750_v30, %v572_v31 }
 0x20e   : > { %v1197_v32 = vpop.f32.mrf.mxu0 }
 0x20f   : > { %v1198_v38 = vadd.f32 %v1197_v32, %v564_v33  ;;  %v1238_v41 = vmax.f32 %v1206_v35, 0.0 }
 0x210   : > { %v1751_v36 = vpop.f32.mrf.mxu0 }
 0x211   : > { %v1209_v39 = vadd.f32 %v1751_v36, %v575_v34  ;;  %v1236_v44 = vmax.f32 %v1198_v38, 0.0 }
 0x212   : > { %v1200_v40 = vpop.f32.mrf.mxu0 }
 0x213   : > { %v1239_v42 = vmax.f32 %v1209_v39, 0.0  ;;  %v1201_v43 = vadd.f32 %v1200_v40, %v567_v37 }
 0x215   : > { %v1577_v45 = vpack.c.bf16 %v1239_v42, %v1238_v41  ;;  %v1237_v46 = vmax.f32 %v1201_v43, 0.0 }
 0x217   : > { %1593 = vst [vmem:[%s2277_s14 + $0x28] sm:$0xff] %v1577_v45   ;;  %v1572_v47 = vpack.c.bf16 %v1237_v46, %v1236_v44 }
 0x219   : > { %1592 = vst [vmem:[%s2277_s14 + $0x20] sm:$0xff] %v1572_v47  }
 0x21c   : > { %v1754_v48 = vpop.f32.mrf.mxu0 }
 0x21d   : > { %v1222_v58 = vadd.f32 %v1754_v48, %v588_v49 }
 0x21e   : > { %v1213_v50 = vpop.f32.mrf.mxu0 }
 0x21f   : > { %v1214_v61 = vadd.f32 %v1213_v50, %v580_v51  ;;  %v1242_v53 = vmax.f32 %v1222_v58, 0.0 }
 0x220   : > { %v1755_v59 = vpop.f32.mrf.mxu0 }
 0x221   : > { %v1225_v62 = vadd.f32 %v1755_v59, %v591_v52  ;;  %v1240_v54 = vmax.f32 %v1214_v61, 0.0 }
 0x222   : > { %v1216_v63 = vpop.f32.mrf.mxu0 }
 0x223   : > { %v1243_v0 = vmax.f32 %v1225_v62, 0.0  ;;  %v1217_v1 = vadd.f32 %v1216_v63, %v583_v60 }
 0x225   : > { %v1587_v2 = vpack.c.bf16 %v1243_v0, %v1242_v53  ;;  %v1241_v55 = vmax.f32 %v1217_v1, 0.0 }
 0x227   : > { %1595 = vst [vmem:[%s2277_s14 + $0x38] sm:$0xff] %v1587_v2   ;;  %v1582_v56 = vpack.c.bf16 %v1241_v55, %v1240_v54 }
 0x229   : > { %1594 = vst [vmem:[%s2277_s14 + $0x30] sm:$0xff] %v1582_v56  }
 0x22a   : > { %1944 = shalt.err (!%p1941_p12)
}
 0x22b   : > { %s1945_s8 = scalar_lea.hbm %s2308_s16, 1024  ;;  %s1949_s30 = scalar_lea.hbm %s2365_s6, 2048 }
 0x22c   : > { %p1946_p1 = scmp.ne.s32.totalorder %s2308_s16, %s1945_s8  ;;  %p1950_p3 = scmp.lt.s32.totalorder %s2308_s16, %s2365_s6 }
 0x22d   : > { %p1951_p4 = scmp.lt.s32.totalorder %s1949_s30, %s1945_s8 }
 0x22e   : > { %p1947_p2 = pnand %p1946_p1, %p2372_p11 }
 0x22f   : > { %p1952_p8 = por %p1951_p4, %p1950_p3 }
 0x230   : > { %p1948_p5 = pneg %p1947_p2 }
 0x232   : > { %p1953_p10 = pnand %p1952_p8, %p1948_p5 }
 0x234   : > { %1956 = shalt.err (!%p1953_p10)
}
 0x235   : > { %s2023_s15 = smov 64   ;;  %s2024_s18 = smov 4  }
 0x236   : > { %1764 = dma.vmem_to_hbm [thread:$0]  (%p2372_p11), %s2303_s13, 1024, %s2308_s16, %s2314_s19, %s2023_s15, %s2023_s15, %s2024_s18  }
 0x237 PF: > { %p1781_p13 = scmp.ge.s32.totalorder %s2015_s26, 2  ;;  %s1353_s24 = sand.u32 1, %s1995_s21  }
 0x238   : > { %p2373_p0 = scmp.ne.s32.totalorder %s2368_s9, 0  ;;  %s1354_s20 = scalar_lea.sflag [#allocation6], %s1353_s24 }
 0x23a   : > { %p1774_p6 = pnand %p1781_p13, %p2373_p0 }
 0x23c   : > { %p1775_p7 = pneg %p1774_p6 }
 0x23e   : > { %1990 = dma.done.wait (%p1775_p7), %s1354_s20, 1024  }
 0x23f   : > { %1992 = vsyncadd (%p1775_p7), %s1354_s20, 4294966272  ;;  %s21_s26 = sadd.s32 1, %s2015_s26   ;;  %s2374_s21 = smov %s1999_s22 }
 0x240   : > { %p18_p9 = scmp.ge.s32.totalorder %s21_s26, 4   ;;  %s2375_s22 = smov %s2003_s23 }
 0x241   : > { %s2376_s23 = smov %s2113_s10  ;;  %s2377_s24 = smov %s2011_s25 }
 0x242   : > { %s2378_s25 = smov %s2380_s29  ;;  %20 = sbr.rel (!%p18_p9) target bundleno = 6 (0x6), region = 101 }
 0x247   :  { %1359 = vsyncpa [#allocation5], 1 }
 0x248   :  { %1361 = vsyncpa [#allocation5 + $0x1], 1 }
 0x249   :  { %1362 = vsyncpa [#allocation8], 1 }
 0x24a   :  { %1363 = vsyncpa [#allocation6], 1 }
 0x24b   :  { %1365 = vsyncpa [#allocation6 + $0x1], 1 }

</bundles_post_ra>
